<compile_context>
chip_gen: v7x
topology: tpu7x:2x2x1
jax: 0.10.0
libtpu: 0.0.40
codegen_flags: <defaults>
</compile_context>

<pallas_src>
import jax
import jax.numpy as jnp
from jax.experimental import pallas as pl
from jax.experimental.pallas import tpu as pltpu


def fm_multihot_kernel(idx_ref, val_ref, w_ref, vt_ref, vvt_ref, bias_ref, out_ref):
    idx = idx_ref[...]                       # (TB, F) int32
    val = val_ref[...]                       # (TB, F) f32
    TB, F = idx.shape
    S = w_ref.shape[0]                       # w_ref : (S, 1)

    # ---- bag matrices: reduce over F before touching the MXU --------------
    iota_s = jax.lax.broadcasted_iota(jnp.int32, (TB, F, S), 2)
    wgt = jnp.where(idx[:, :, None] == iota_s, val[:, :, None], 0.0)   # val * onehot
    a = jnp.sum(wgt, axis=1)                 # (TB, S)   sum_f val   * onehot
    a2 = jnp.sum(wgt * wgt, axis=1)          # (TB, S)   sum_f val^2 * onehot

    # ---- put the batch on lanes for the rest of the kernel ----------------
    at = jnp.transpose(a)                    # (S, TB)
    a2t = jnp.transpose(a2)                  # (S, TB)

    # first order: sum_s A[b,s] * w[s]  ->  (1, TB)
    first = jnp.sum(at * w_ref[...], axis=0, keepdims=True)

    # second order: 0.5 * sum_k ((sum_f v x)^2 - sum_f (v x)^2)
    sum_f = jnp.dot(vt_ref[...], at, preferred_element_type=jnp.float32)    # (K, TB)
    sum_sq = jnp.dot(vvt_ref[...], a2t, preferred_element_type=jnp.float32)  # (K, TB)
    second = 0.5 * jnp.sum(sum_f * sum_f - sum_sq, axis=0, keepdims=True)    # (1, TB)

    # lane-dense (1, TB) store
    out_ref[...] = first + second + bias_ref[0, 0]


def _round_up(x, m):
    return (x + m - 1) // m * m


def fm_multihot(feature_idx, feature_values, w, v, fm_bias, *, batch_tile=256):
    """FM multi-hot forward: logits (B,) = second_order + first_order + bias."""
    B, F = feature_idx.shape
    S, K = v.shape

    # Batch tile: multiple of 8 (sublane), capped at 256 (bounds the O(TB*F*S)
    # bag intermediate well under the 64 MiB VMEM of v7x as well as v5e/v6e).
    TB = min(batch_tile, _round_up(B, 8))
    Bp = _round_up(B, TB)

    idx = feature_idx.astype(jnp.int32)
    val = feature_values.astype(jnp.float32)
    if Bp != B:
        # padded rows: idx=0 / val=0 -> they only see the bias; sliced off below.
        idx = jnp.pad(idx, ((0, Bp - B), (0, 0)))
        val = jnp.pad(val, ((0, Bp - B), (0, 0)))

    w32 = w.astype(jnp.float32)                     # (S, 1)
    vt = jnp.transpose(v.astype(jnp.float32))       # (K, S)
    vvt = vt * vt                                   # (K, S)
    bias2d = fm_bias.reshape(1, 1).astype(jnp.float32)

    grid = (Bp // TB,)
    out = pl.pallas_call(
        fm_multihot_kernel,
        out_shape=jax.ShapeDtypeStruct((1, Bp), jnp.float32),
        grid_spec=pltpu.PrefetchScalarGridSpec(
            num_scalar_prefetch=0,
            grid=grid,
            in_specs=[
                pl.BlockSpec((TB, F), lambda i: (i, 0)),      # feature_idx tile
                pl.BlockSpec((TB, F), lambda i: (i, 0)),      # feature_values tile
                pl.BlockSpec((S, 1), lambda i: (0, 0)),       # w  (first-order table)
                pl.BlockSpec((K, S), lambda i: (0, 0)),       # v^T
                pl.BlockSpec((K, S), lambda i: (0, 0)),       # (v*v)^T
                pl.BlockSpec(memory_space=pltpu.MemorySpace.SMEM),  # scalar bias
            ],
            out_specs=pl.BlockSpec((1, TB), lambda i: (0, i)),
        ),
        compiler_params=pltpu.CompilerParams(
            dimension_semantics=("parallel",),
            vmem_limit_bytes=32 * 1024 * 1024,
        ),
    )(idx, val, w32, vt, vvt, bias2d)
    return out[0, :B]


def fm_multihot_ref(feature_idx, feature_values, w, v, fm_bias):
    # Pure-JAX reference (matches the PyTorch FM semantics).
    xw = w[feature_idx, 0] * feature_values                      # (B, F)
    first = xw.sum(axis=1)                                       # (B,)
    xv = v[feature_idx] * feature_values[..., None]              # (B, F, K)
    second = 0.5 * ((xv.sum(axis=1)) ** 2 - (xv ** 2).sum(axis=1)).sum(axis=1)
    return second + first + fm_bias[0]


if __name__ == "__main__":
    # Small synthetic config consistent with the module's __init__.
    params = dict(embedding_size=16, feature_size=32, max_len=4)
    num_fields = 2
    F = num_fields * params["max_len"]      # 8 multi-hot feature slots per sample
    S = params["feature_size"]
    K = params["embedding_size"]

    key = jax.random.PRNGKey(0)
    k_idx, k_val, k_w, k_v = jax.random.split(key, 4)

    # Parameters (FirstOrderMutiHot: (S,1); SecondOrderMutiHot: (S,K); bias = 0).
    w = 0.05 * jax.random.normal(k_w, (S, 1), dtype=jnp.float32)
    v = 0.05 * jax.random.normal(k_v, (S, K), dtype=jnp.float32)
    fm_bias = jnp.zeros((1,), dtype=jnp.float32)

    # --- primary small test (B=4) ------------------------------------------
    B = 4
    feature_idx = jax.random.randint(k_idx, (B, F), 0, S, dtype=jnp.int32)
    feature_values = jax.random.uniform(k_val, (B, F), dtype=jnp.float32)

    logits = fm_multihot(feature_idx, feature_values, w, v, fm_bias)
    jax.block_until_ready(logits)
    ref = fm_multihot_ref(feature_idx, feature_values, w, v, fm_bias)
    assert logits.shape == (B,)
    assert jnp.allclose(logits, ref, rtol=1e-4, atol=1e-5), (logits, ref)

    # --- secondary test: exercises batch tiling (grid > 1) + tail padding ---
    B2 = 300
    k_idx2, k_val2 = jax.random.split(jax.random.PRNGKey(1))
    feature_idx2 = jax.random.randint(k_idx2, (B2, F), 0, S, dtype=jnp.int32)
    feature_values2 = jax.random.uniform(k_val2, (B2, F), dtype=jnp.float32)

    logits2 = fm_multihot(feature_idx2, feature_values2, w, v, fm_bias)
    jax.block_until_ready(logits2)
    ref2 = fm_multihot_ref(feature_idx2, feature_values2, w, v, fm_bias)
    assert logits2.shape == (B2,)
    assert jnp.allclose(logits2, ref2, rtol=1e-4, atol=1e-5), (logits2, ref2)

    print("KERNEL_OK")
</pallas_src>

<mosaic_0001>
module attributes {stable_mosaic.version = 11 : i64} {
  func.func @fm_multihot_kernel(%arg0: i32, %arg1: memref<8x8xi32, #tpu.memory_space<vmem>>, %arg2: memref<8x8xf32, #tpu.memory_space<vmem>>, %arg3: memref<32x1xf32, #tpu.memory_space<vmem>>, %arg4: memref<16x32xf32, #tpu.memory_space<vmem>>, %arg5: memref<16x32xf32, #tpu.memory_space<vmem>>, %arg6: memref<1x1xf32, #tpu.memory_space<smem>>, %arg7: memref<1x8xf32, #tpu.memory_space<vmem>>) attributes {dimension_semantics = [#tpu.dimension_semantics<parallel>], iteration_bounds = array<i64: 1>, scalar_prefetch = 0 : i64, scratch_operands = 0 : i64, tpu.core_type = #tpu.core_type<tc>, window_params = [{transform_indices = @transform_0, window_bounds = array<i64: 8, 8>}, {transform_indices = @transform_1, window_bounds = array<i64: 8, 8>}, {pipeline_mode = #tpu.pipeline_mode<synchronous>, transform_indices = @transform_2, window_bounds = array<i64: 32, 1>}, {pipeline_mode = #tpu.pipeline_mode<synchronous>, transform_indices = @transform_3, window_bounds = array<i64: 16, 32>}, {pipeline_mode = #tpu.pipeline_mode<synchronous>, transform_indices = @transform_4, window_bounds = array<i64: 16, 32>}, {transform_indices = @transform_5, window_bounds = array<i64: 1, 1>}, {transform_indices = @transform_6, window_bounds = array<i64: 1, 8>}]} {
    %c0 = arith.constant 0 : index
    %c0_0 = arith.constant 0 : index
    %0 = vector.load %arg1[%c0, %c0_0] : memref<8x8xi32, #tpu.memory_space<vmem>>, vector<8x8xi32>
    %c0_1 = arith.constant 0 : index
    %c0_2 = arith.constant 0 : index
    %1 = vector.load %arg2[%c0_1, %c0_2] : memref<8x8xf32, #tpu.memory_space<vmem>>, vector<8x8xf32>
    %2 = tpu.iota {dimensions = array<i32: 2>} : vector<8x8x32xi32>
    %3 = vector.shape_cast %0 : vector<8x8xi32> to vector<8x8x1xi32>
    %4 = vector.broadcast %3 : vector<8x8x1xi32> to vector<8x8x32xi32>
    %5 = arith.cmpi eq, %4, %2 : vector<8x8x32xi32>
    %6 = vector.shape_cast %1 : vector<8x8xf32> to vector<8x8x1xf32>
    %cst = arith.constant 0.000000e+00 : f32
    %7 = vector.shape_cast %6 : vector<8x8x1xf32> to vector<8x8x1xf32>
    %8 = vector.broadcast %7 : vector<8x8x1xf32> to vector<8x8x32xf32>
    %9 = vector.broadcast %cst : f32 to vector<8x8x32xf32>
    %10 = arith.select %5, %8, %9 : vector<8x8x32xi1>, vector<8x8x32xf32>
    %cst_3 = arith.constant dense<0.000000e+00> : vector<8x32xf32>
    %11 = vector.multi_reduction <add>, %10, %cst_3 [1] : vector<8x8x32xf32> to vector<8x32xf32>
    %12 = arith.mulf %10, %10 : vector<8x8x32xf32>
    %cst_4 = arith.constant dense<0.000000e+00> : vector<8x32xf32>
    %13 = vector.multi_reduction <add>, %12, %cst_4 [1] : vector<8x8x32xf32> to vector<8x32xf32>
    %14 = tpu.transpose %11, [1, 0] : vector<8x32xf32> -> vector<32x8xf32>
    %15 = tpu.transpose %13, [1, 0] : vector<8x32xf32> -> vector<32x8xf32>
    %c0_5 = arith.constant 0 : index
    %c0_6 = arith.constant 0 : index
    %16 = vector.load %arg3[%c0_5, %c0_6] : memref<32x1xf32, #tpu.memory_space<vmem>>, vector<32x1xf32>
    %17 = vector.broadcast %16 : vector<32x1xf32> to vector<32x8xf32>
    %18 = arith.mulf %14, %17 : vector<32x8xf32>
    %cst_7 = arith.constant dense<0.000000e+00> : vector<8xf32>
    %19 = vector.multi_reduction <add>, %18, %cst_7 [0] : vector<32x8xf32> to vector<8xf32>
    %20 = vector.shape_cast %19 : vector<8xf32> to vector<1x8xf32>
    %c0_8 = arith.constant 0 : index
    %c0_9 = arith.constant 0 : index
    %21 = vector.load %arg4[%c0_8, %c0_9] : memref<16x32xf32, #tpu.memory_space<vmem>>, vector<16x32xf32>
    %cst_10 = arith.constant dense<0.000000e+00> : vector<16x8xf32>
    %22 = tpu.matmul %21, %14, %cst_10 {dimension_numbers = #tpu.dot_dimension_numbers<[1], [0], [0], [1], [0, 0, 1, 1], [], []>} : vector<16x32xf32>, vector<32x8xf32>, vector<16x8xf32> -> vector<16x8xf32>
    %c0_11 = arith.constant 0 : index
    %c0_12 = arith.constant 0 : index
    %23 = vector.load %arg5[%c0_11, %c0_12] : memref<16x32xf32, #tpu.memory_space<vmem>>, vector<16x32xf32>
    %cst_13 = arith.constant dense<0.000000e+00> : vector<16x8xf32>
    %24 = tpu.matmul %23, %15, %cst_13 {dimension_numbers = #tpu.dot_dimension_numbers<[1], [0], [0], [1], [0, 0, 1, 1], [], []>} : vector<16x32xf32>, vector<32x8xf32>, vector<16x8xf32> -> vector<16x8xf32>
    %25 = arith.mulf %22, %22 : vector<16x8xf32>
    %26 = arith.subf %25, %24 : vector<16x8xf32>
    %cst_14 = arith.constant dense<0.000000e+00> : vector<8xf32>
    %27 = vector.multi_reduction <add>, %26, %cst_14 [0] : vector<16x8xf32> to vector<8xf32>
    %28 = vector.shape_cast %27 : vector<8xf32> to vector<1x8xf32>
    %cst_15 = arith.constant 5.000000e-01 : f32
    %29 = vector.broadcast %cst_15 : f32 to vector<1x8xf32>
    %30 = arith.mulf %29, %28 : vector<1x8xf32>
    %31 = arith.addf %20, %30 : vector<1x8xf32>
    %c0_16 = arith.constant 0 : index
    %c0_17 = arith.constant 0 : index
    %32 = memref.load %arg6[%c0_16, %c0_17] : memref<1x1xf32, #tpu.memory_space<smem>>
    %33 = vector.broadcast %32 : f32 to vector<1x8xf32>
    %34 = arith.addf %31, %33 : vector<1x8xf32>
    %c0_18 = arith.constant 0 : index
    %c0_19 = arith.constant 0 : index
    %35 = vector.load %arg7[%c0_18, %c0_19] : memref<1x8xf32, #tpu.memory_space<vmem>>, vector<1x8xf32>
    tpu.vector_store %arg7[%c0_18, %c0_19], %34 {strides = array<i32>} : memref<1x8xf32, #tpu.memory_space<vmem>>, vector<1x8xf32>,
    return
  }
  func.func @transform_0(%arg0: i32) -> (i32, i32) {
    %c0_i32 = arith.constant 0 : i32
    %c0_i32_0 = arith.constant 0 : i32
    return %arg0, %c0_i32 : i32, i32
  }
  func.func @transform_1(%arg0: i32) -> (i32, i32) {
    %c0_i32 = arith.constant 0 : i32
    %c0_i32_0 = arith.constant 0 : i32
    return %arg0, %c0_i32 : i32, i32
  }
  func.func @transform_2(%arg0: i32) -> (i32, i32) {
    %c0_i32 = arith.constant 0 : i32
    %c0_i32_0 = arith.constant 0 : i32
    %c0_i32_1 = arith.constant 0 : i32
    return %c0_i32, %c0_i32_0 : i32, i32
  }
  func.func @transform_3(%arg0: i32) -> (i32, i32) {
    %c0_i32 = arith.constant 0 : i32
    %c0_i32_0 = arith.constant 0 : i32
    %c0_i32_1 = arith.constant 0 : i32
    return %c0_i32, %c0_i32_0 : i32, i32
  }
  func.func @transform_4(%arg0: i32) -> (i32, i32) {
    %c0_i32 = arith.constant 0 : i32
    %c0_i32_0 = arith.constant 0 : i32
    %c0_i32_1 = arith.constant 0 : i32
    return %c0_i32, %c0_i32_0 : i32, i32
  }
  func.func @transform_5(%arg0: i32) -> (i32, i32) {
    %c0_i32 = arith.constant 0 : i32
    %c0_i32_0 = arith.constant 0 : i32
    %c0_i32_1 = arith.constant 0 : i32
    return %c0_i32, %c0_i32_0 : i32, i32
  }
  func.func @transform_6(%arg0: i32) -> (i32, i32) {
    %c0_i32 = arith.constant 0 : i32
    %c0_i32_0 = arith.constant 0 : i32
    return %c0_i32, %arg0 : i32, i32
  }
}

</mosaic_0001>

<bundles_post_ra>
// kernel: tpu_custom_call.1
= control target key start
LH: loop header
LB: loop body
LE: loop exit
PB: predicated region body
PF: predicated region fallthrough
CT: control target
= control target key end

     0   :  { %12 = vsyncpa [#allocation4], 0  ;;  %s853_s0 = inlined_call_operand.hbm [shape: s32[8,8], index: 0, kind: input, shape index: {}]   ;;  %s854_s1 = inlined_call_operand.vmem [shape: f32[8,8], index: 1, kind: input, shape index: {}]   ;;  %s855_s2 = inlined_call_operand.vmem [shape: f32[32,1], index: 2, kind: input, shape index: {}]   ;;  %s856_s3 = inlined_call_operand.vmem [shape: f32[16,32], index: 3, kind: input, shape index: {}]   ;;  %s857_s4 = inlined_call_operand.vmem [shape: f32[16,32], index: 4, kind: input, shape index: {}]   ;;  %s858_s5 = inlined_call_operand.<no memory space> [shape: f32[1,1], index: 5, kind: input, shape index: {}]   ;;  %s859_s6 = inlined_call_operand.hbm [shape: f32[1,8], index: 6, kind: output, shape index: {}]  }
   0x1   :  { %13 = vsyncpa [#allocation5], 0  ;;  %s697_s21 = smov [#allocation3]   ;;  %s649_s25 = scalar_lea.hbm %s853_s0, 128 }
   0x2   :  { %s20_s22 = sshll.u32 %s697_s21, 4  ;;  %p650_p0 = scmp.ne.s32.totalorder %s853_s0, %s649_s25  ;;  %s21_s22 = int_to_ptr.vmem [resolvable:$true] %s20_s22 }
   0x3   :  { %p653_p1 = scmp.lt.u32.totalorder %s649_s25, %s853_s0 }
   0x5   :  { %p655_p2 = pnand %p653_p1, %p650_p0 }
   0x7   :  { %658 = shalt.err (!%p655_p2)
}
   0x8   :  { %s659_s30 = scalar_lea.vmem %s21_s22, 128  ;;  %p664_p4 = scmp.lt.s32.totalorder %s21_s22, %s21_s22 }
   0x9   :  { %p660_p3 = scmp.ne.s32.totalorder %s21_s22, %s659_s30  ;;  %p665_p5 = scmp.lt.s32.totalorder %s659_s30, %s659_s30 }
   0xb   :  { %p666_p6 = por %p665_p5, %p664_p4 }
   0xd   :  { %p667_p7 = pnand %p666_p6, %p660_p3 }
   0xf   :  { %670 = shalt.err (!%p667_p7)
}
  0x10   :  { %23 = dma.hbm_to_vmem [thread:$0]  %s853_s0, 128, %s21_s22, [#allocation4]  }
  0x11   :  { %693 = dma.done.wait [#allocation4], 128  }
  0x12   :  { %694 = vsyncadd [#allocation4], 4294967168  ;;  %v39_v0 = vlaneseq  ;;  %v37_v5 = vld [vmem:[#allocation3] sm:$0xff]  ;;  %v698_v28 = vmov 0   ;;  %v346_v30 = vld [vmem:[%s855_s2 + $0x8] sm:$0xff]  ;;  %vm169_vm0 = vcmask 261120  }
  0x13   :  { %v38_v6 = vld [vmem:[%s854_s1] sm:$0xff]  ;;  %647 = vset.pattern.permute.xlu1 %v698_v28  ;;  %v347_v31 = vld [vmem:[%s855_s2 + $0x10] sm:$0xff]  ;;  %v348_v32 = vld [vmem:[%s855_s2 + $0x18] sm:$0xff]  ;;  %vm298_vm6 = vcmask 1041409   ;;  %vm300_vm10 = vcmask 1042434   ;;  %vm302_vm11 = vcmask 1043459  }
  0x14   :  { %v42_v1 = vshrl.u32 %v39_v0, 7  ;;  %v345_v29 = vld [vmem:[%s855_s2] sm:$0xff]  ;;  %v763_v33 = vand.u32 127, %v39_v0  ;;  %vm304_vm12 = vcmask 1044484   ;;  %vm306_vm13 = vcmask 1045509   ;;  %s699_s24 = smov [#allocation6]  }
  0x15   :  { %vm308_vm14 = vcmask 1046534   ;;  %vm310_vm15 = vcmask 1047559   ;;  %s596_s25 = sshll.u32 %s699_s24, 4  ;;  %s597_s25 = int_to_ptr.vmem [resolvable:$true] %s596_s25 }
  0x16   :  { %v57_v2 = vsub.s32 2, %v42_v1  ;;  %v43_v3 = vsub.s32 0, %v42_v1  ;;  %v50_v4 = vsub.s32 1, %v42_v1  ;;  %v64_v11 = vsub.s32 3, %v42_v1  ;;  %s671_s26 = scalar_lea.vmem %s597_s25, 16  ;;  %s675_s27 = scalar_lea.vmem %s597_s25, 32 }
  0x17   :  { %v71_v14 = vsub.s32 4, %v42_v1  ;;  %v78_v17 = vsub.s32 5, %v42_v1  ;;  %v85_v20 = vsub.s32 6, %v42_v1  ;;  %v92_v23 = vsub.s32 7, %v42_v1  ;;  %p672_p8 = scmp.ne.s32.totalorder %s597_s25, %s671_s26  ;;  %p676_p9 = scmp.lt.s32.totalorder %s597_s25, %s597_s25 }
  0x18   :  { %v58_v7 = vrot.slane %v37_v5, %v57_v2  ;;  %v44_v8 = vrot.slane %v37_v5, %v43_v3  ;;  %v108_v9 = vrot.slane %v38_v6, %v43_v3  ;;  %v51_v10 = vrot.slane %v37_v5, %v50_v4  ;;  %p677_p10 = scmp.lt.s32.totalorder %s675_s27, %s671_s26 }
  0x19   :  { %v65_v12 = vrot.slane %v37_v5, %v64_v11  ;;  %v115_v13 = vrot.slane %v38_v6, %v50_v4  ;;  %v72_v15 = vrot.slane %v37_v5, %v71_v14  ;;  %v122_v16 = vrot.slane %v38_v6, %v57_v2 }
  0x1a   :  { %60 = vbcast.lane.b32.xlu1 %v58_v7, 256  ;;  %46 = vbcast.lane.b32.xlu0 %v44_v8, 256  ;;  %v79_v18 = vrot.slane %v37_v5, %v78_v17  ;;  %v129_v19 = vrot.slane %v38_v6, %v64_v11  ;;  %v86_v21 = vrot.slane %v37_v5, %v85_v20  ;;  %p678_p11 = por %p677_p10, %p676_p9 }
  0x1b   :  { %v136_v22 = vrot.slane %v38_v6, %v71_v14  ;;  %v93_v24 = vrot.slane %v37_v5, %v92_v23  ;;  %v143_v25 = vrot.slane %v38_v6, %v78_v17  ;;  %v157_v26 = vrot.slane %v38_v6, %v92_v23 }
  0x1c   :  { %v150_v27 = vrot.slane %v38_v6, %v85_v20  ;;  %p679_p12 = pnand %p678_p11, %p672_p8 }
  0x1e   :  { %110 = vbcast.lane.b32.xlu1 %v108_v9, 256  ;;  %53 = vbcast.lane.b32.xlu0 %v51_v10, 256 }
  0x22   :  { %67 = vbcast.lane.b32.xlu1 %v65_v12, 256  ;;  %117 = vbcast.lane.b32.xlu0 %v115_v13, 256 }
  0x26   :  { %74 = vbcast.lane.b32.xlu1 %v72_v15, 256  ;;  %124 = vbcast.lane.b32.xlu0 %v122_v16, 256 }
  0x2a   :  { %81 = vbcast.lane.b32.xlu1 %v79_v18, 256  ;;  %131 = vbcast.lane.b32.xlu0 %v129_v19, 256 }
  0x2e   :  { %88 = vbcast.lane.b32.xlu1 %v86_v21, 256  ;;  %138 = vbcast.lane.b32.xlu0 %v136_v22, 256 }
  0x32   :  { %95 = vbcast.lane.b32.xlu1 %v93_v24, 256  ;;  %145 = vbcast.lane.b32.xlu0 %v143_v25, 256 }
  0x36   :  { %159 = vbcast.lane.b32.xlu1 %v157_v26, 256  ;;  %152 = vbcast.lane.b32.xlu0 %v150_v27, 256 }
  0x3a   :  { %351 = vperm.xlu1 %647, %v345_v29  }
  0x3e   :  { %356 = vperm.xlu1 %647, %v346_v30  }
  0x42   :  { %361 = vperm.xlu1 %647, %v347_v31  }
  0x46   :  { %366 = vperm.xlu1 %647, %v348_v32  }
  0x8c   :  { %v61_v34 = vpop.permute.xlu1 %60  ;;  %v47_v35 = vpop.permute.xlu0 %46 }
  0x8d   :  { %vm97_vm1 = vcmp.eq.s32.totalorder %v47_v35, %v763_v33  ;;  %vm99_vm3 = vcmp.eq.s32.totalorder %v61_v34, %v763_v33 }
  0x90   :  { %v111_v36 = vpop.permute.xlu1 %110  ;;  %v54_v37 = vpop.permute.xlu0 %53 }
  0x91   :  { %v161_v38 = vsel %vm97_vm1, %v111_v36, 0.0  ;;  %vm98_vm2 = vcmp.eq.s32.totalorder %v54_v37, %v763_v33  ;;  %vm373_vm1 = vcmask 64512  }
  0x92   :  { %v170_v39 = vsel %vm169_vm0, %v161_v38, 0.0  ;;  %v226_v40 = vmul.f32 %v161_v38, %v161_v38 }
  0x93   :  { %v171_v41 = vrot.slane %v170_v39, 4 }
  0x94   :  { %v234_v42 = vsel %vm169_vm0, %v226_v40, 0.0  ;;  %v68_v43 = vpop.permute.xlu1 %67  ;;  %v118_v44 = vpop.permute.xlu0 %117 }
  0x95   :  { %v235_v45 = vrot.slane %v234_v42, 4  ;;  %v162_v46 = vsel %vm98_vm2, %v118_v44, 0.0  ;;  %v172_v47 = vadd.f32 %v171_v41, %v170_v39  ;;  %vm100_vm4 = vcmp.eq.s32.totalorder %v68_v43, %v763_v33 }
  0x96   :  { %v177_v48 = vsel %vm169_vm0, %v162_v46, 0.0  ;;  %v227_v49 = vmul.f32 %v162_v46, %v162_v46 }
  0x97   :  { %v236_v50 = vadd.f32 %v235_v45, %v234_v42  ;;  %v178_v51 = vrot.slane %v177_v48, 4  ;;  %v173_v57 = vrot.slane %v172_v47, 2 }
  0x98   :  { %v241_v52 = vsel %vm169_vm0, %v227_v49, 0.0  ;;  %v75_v53 = vpop.permute.xlu1 %74  ;;  %v125_v54 = vpop.permute.xlu0 %124 }
  0x99   :  { %v179_v55 = vadd.f32 %v178_v51, %v177_v48  ;;  %v242_v56 = vrot.slane %v241_v52, 4  ;;  %v163_v58 = vsel %vm99_vm3, %v125_v54, 0.0  ;;  %v237_v59 = vrot.slane %v236_v50, 2 }
  0x9a   :  { %v184_v62 = vsel %vm169_vm0, %v163_v58, 0.0  ;;  %v228_v63 = vmul.f32 %v163_v58, %v163_v58  ;;  %v174_v4 = vadd.f32 %v173_v57, %v172_v47  ;;  %vm101_vm5 = vcmp.eq.s32.totalorder %v75_v53, %v763_v33 }
  0x9b   :  { %v180_v60 = vrot.slane %v179_v55, 2  ;;  %v243_v61 = vadd.f32 %v242_v56, %v241_v52  ;;  %v185_v5 = vrot.slane %v184_v62, 4  ;;  %v238_v8 = vadd.f32 %v237_v59, %v236_v50 }
  0x9c   :  { %v82_v0 = vpop.permute.xlu1 %81  ;;  %v132_v1 = vpop.permute.xlu0 %131  ;;  %v248_v6 = vsel %vm169_vm0, %v228_v63, 0.0  ;;  %v175_v19 = vrot.slane %v174_v4, 1 }
  0x9d   :  { %v181_v2 = vadd.f32 %v180_v60, %v179_v55  ;;  %v244_v3 = vrot.slane %v243_v61, 2  ;;  %v164_v7 = vsel %vm100_vm4, %v132_v1, 0.0  ;;  %v249_v10 = vrot.slane %v248_v6, 4 }
  0x9e   :  { %v186_v11 = vadd.f32 %v185_v5, %v184_v62  ;;  %v191_v12 = vsel %vm169_vm0, %v164_v7, 0.0  ;;  %v229_v13 = vmul.f32 %v164_v7, %v164_v7  ;;  %v239_v23 = vrot.slane %v238_v8, 1 }
  0x9f   :  { %v245_v9 = vadd.f32 %v244_v3, %v243_v61  ;;  %v182_v16 = vrot.slane %v181_v2, 1  ;;  %v250_v17 = vadd.f32 %v249_v10, %v248_v6  ;;  %v192_v18 = vrot.slane %v191_v12, 4 }
  0xa0   :  { %v89_v14 = vpop.permute.xlu1 %88  ;;  %v139_v15 = vpop.permute.xlu0 %138  ;;  %v255_v21 = vsel %vm169_vm0, %v229_v13, 0.0  ;;  %v187_v25 = vrot.slane %v186_v11, 2  ;;  %v176_v36 = vadd.f32 %v175_v19, %v174_v4  ;;  %vm102_vm7 = vcmp.eq.s32.totalorder %v82_v0, %v763_v33 }
  0xa1   :  { %v246_v20 = vrot.slane %v245_v9, 1  ;;  %v165_v22 = vsel %vm101_vm5, %v139_v15, 0.0  ;;  %v193_v24 = vadd.f32 %v192_v18, %v191_v12  ;;  %v256_v26 = vrot.slane %v255_v21, 4 }
  0xa2   :  { %v198_v27 = vsel %vm169_vm0, %v165_v22, 0.0  ;;  %v230_v29 = vmul.f32 %v165_v22, %v165_v22  ;;  %v183_v32 = vadd.f32 %v182_v16, %v181_v2  ;;  %v251_v34 = vrot.slane %v250_v17, 2 }
  0xa3   :  { %v199_v35 = vrot.slane %v198_v27, 4  ;;  %v247_v37 = vadd.f32 %v246_v20, %v245_v9  ;;  %v194_v39 = vrot.slane %v193_v24, 2  ;;  %v257_v40 = vadd.f32 %v256_v26, %v255_v21 }
  0xa4   :  { %v96_v30 = vpop.permute.xlu1 %95  ;;  %v146_v31 = vpop.permute.xlu0 %145  ;;  %v262_v38 = vsel %vm169_vm0, %v230_v29, 0.0  ;;  %v240_v43 = vadd.f32 %v239_v23, %v238_v8  ;;  %v188_v44 = vadd.f32 %v187_v25, %v186_v11  ;;  %v782_v46 = vsel %vm298_vm6, %v183_v32, %v176_v36 }
  0xa5   :  { %v200_v41 = vadd.f32 %v199_v35, %v198_v27  ;;  %v263_v42 = vrot.slane %v262_v38, 4  ;;  %v166_v45 = vsel %vm102_vm7, %v146_v31, 0.0  ;;  %v784_v47 = vadd.f32 %v251_v34, %v250_v17 }
  0xa6   :  { %vm103_vm8 = vcmp.eq.s32.totalorder %v89_v14, %v763_v33  ;;  %v788_v51 = vsel %vm298_vm6, %v247_v37, %v240_v43  ;;  %v205_v53 = vsel %vm169_vm0, %v166_v45, 0.0  ;;  %v231_v54 = vmul.f32 %v166_v45, %v166_v45 }
  0xa7   :  { %v264_v48 = vadd.f32 %v263_v42, %v262_v38  ;;  %v201_v52 = vrot.slane %v200_v41, 2  ;;  %v195_v55 = vadd.f32 %v194_v39, %v193_v24  ;;  %v258_v56 = vrot.slane %v257_v40, 2 }
  0xa8   :  { %v160_v49 = vpop.permute.xlu1 %159  ;;  %v153_v50 = vpop.permute.xlu0 %152  ;;  %vm104_vm9 = vcmp.eq.s32.totalorder %v96_v30, %v763_v33  ;;  %v206_v57 = vrot.slane %v205_v53, 4  ;;  %v189_v58 = vrot.slane %v188_v44, 1  ;;  %v269_v59 = vsel %vm169_vm0, %v231_v54, 0.0 }
  0xa9   :  { %v168_v60 = vsel %vm104_vm9, %v160_v49, 0.0  ;;  %v167_v61 = vsel %vm103_vm8, %v153_v50, 0.0  ;;  %v253_v62 = vrot.slane %v784_v47, 1  ;;  %v265_v63 = vrot.slane %v264_v48, 2 }
  0xaa   :  { %v207_v0 = vadd.f32 %v206_v57, %v205_v53  ;;  %v270_v1 = vrot.slane %v269_v59, 4  ;;  %v202_v2 = vadd.f32 %v201_v52, %v200_v41  ;;  %v219_v3 = vsel %vm169_vm0, %v168_v60, 0.0 }
  0xab   :  { %v233_v4 = vmul.f32 %v168_v60, %v168_v60  ;;  %v212_v5 = vsel %vm169_vm0, %v167_v61, 0.0  ;;  %v196_v33 = vrot.slane %v195_v55, 1  ;;  %v259_v6 = vadd.f32 %v258_v56, %v257_v40 }
  0xac   :  { %v208_v7 = vrot.slane %v207_v0, 2  ;;  %v271_v8 = vadd.f32 %v270_v1, %v269_v59  ;;  %v220_v9 = vrot.slane %v219_v3, 4  ;;  %v213_v11 = vrot.slane %v212_v5, 4 }
  0xad   :  { %v283_v10 = vsel %vm169_vm0, %v233_v4, 0.0  ;;  %v232_v12 = vmul.f32 %v167_v61, %v167_v61  ;;  %v266_v13 = vadd.f32 %v265_v63, %v264_v48  ;;  %v203_v17 = vrot.slane %v202_v2, 1  ;;  %v470_v4 = vld [vmem:[%s857_s4] sm:$0xff] }
  0xae   :  { %v209_v14 = vadd.f32 %v208_v7, %v207_v0  ;;  %v272_v15 = vrot.slane %v271_v8, 2  ;;  %v284_v16 = vrot.slane %v283_v10, 4  ;;  %v221_v18 = vadd.f32 %v220_v9, %v219_v3  ;;  %632 = vmatprep.mubr.msk.f32.mxu1 %vm169_vm0, %v470_v4 }
  0xaf   :  { %v214_v19 = vadd.f32 %v213_v11, %v212_v5  ;;  %v276_v20 = vsel %vm169_vm0, %v232_v12, 0.0  ;;  %v190_v25 = vadd.f32 %v189_v58, %v188_v44  ;;  %v260_v26 = vrot.slane %v259_v6, 1  ;;  %v471_v5 = vld [vmem:[%s857_s4 + $0x8] sm:$0xff] }
  0xb0   :  { %v210_v21 = vrot.slane %v209_v14, 1  ;;  %v273_v22 = vadd.f32 %v272_v15, %v271_v8  ;;  %v285_v23 = vadd.f32 %v284_v16, %v283_v10  ;;  %v277_v24 = vrot.slane %v276_v20, 4 }
  0xb1   :  { %v222_v27 = vrot.slane %v221_v18, 2  ;;  %v215_v29 = vrot.slane %v214_v19, 2  ;;  %v197_v30 = vadd.f32 %v196_v33, %v195_v55  ;;  %v267_v31 = vrot.slane %v266_v13, 1 }
  0xb2   :  { %v286_v32 = vrot.slane %v285_v23, 2  ;;  %v278_v34 = vadd.f32 %v277_v24, %v276_v20  ;;  %v204_v35 = vadd.f32 %v203_v17, %v202_v2  ;;  %v274_v36 = vrot.slane %v273_v22, 1 }
  0xb3   :  { %v223_v37 = vadd.f32 %v222_v27, %v221_v18  ;;  %v216_v38 = vadd.f32 %v215_v29, %v214_v19  ;;  %v254_v39 = vadd.f32 %v253_v62, %v784_v47  ;;  %v211_v40 = vadd.f32 %v210_v21, %v209_v14 }
  0xb4   :  { %v287_v41 = vadd.f32 %v286_v32, %v285_v23  ;;  %v279_v42 = vrot.slane %v278_v34, 2  ;;  %v301_v43 = vsel %vm300_vm10, %v190_v25, %v782_v46  ;;  %v261_v44 = vadd.f32 %v260_v26, %v259_v6  ;;  %v388_v25 = vld [vmem:[%s856_s3 + $0x8] sm:$0xff] }
  0xb5   :  { %v224_v45 = vrot.slane %v223_v37, 1  ;;  %v217_v48 = vrot.slane %v216_v38, 1  ;;  %v268_v49 = vadd.f32 %v267_v31, %v266_v13  ;;  %v303_v52 = vsel %vm302_vm11, %v197_v30, %v301_v43 }
  0xb6   :  { %v280_v50 = vadd.f32 %v279_v42, %v278_v34  ;;  %v288_v53 = vrot.slane %v287_v41, 1  ;;  %v275_v54 = vadd.f32 %v274_v36, %v273_v22  ;;  %v305_v57 = vsel %vm304_vm12, %v204_v35, %v303_v52 }
  0xb7   :  { %v218_v55 = vadd.f32 %v217_v48, %v216_v38  ;;  %v225_v56 = vadd.f32 %v224_v45, %v223_v37  ;;  %v307_v58 = vsel %vm306_vm13, %v211_v40, %v305_v57  ;;  %v481_v59 = vsel %vm300_vm10, %v254_v39, %v788_v51  ;;  %v387_v51 = vld [vmem:[%s856_s3] sm:$0xff] }
  0xb8   :  { %v281_v47 = vrot.slane %v280_v50, 1  ;;  %v289_v60 = vadd.f32 %v288_v53, %v287_v41  ;;  %v482_v61 = vsel %vm302_vm11, %v261_v44, %v481_v59  ;;  %627 = vmatprep.mubr.msk.f32.mxu0 %vm169_vm0, %v387_v51 }
  0xb9   :  { %v309_v46 = vsel %vm308_vm14, %v218_v55, %v307_v58  ;;  %v483_v0 = vsel %vm304_vm12, %v268_v49, %v482_v61  ;;  %v352_v33 = vpop.permute.xlu1 %351  ;;  %v586_v55 = vstv %s858_s5 }
  0xba   :  { %v311_v62 = vsel %vm310_vm15, %v225_v56, %v309_v46  ;;  %v282_v63 = vadd.f32 %v281_v47, %v280_v50  ;;  %v484_v1 = vsel %vm306_vm13, %v275_v54, %v483_v0 }
  0xbb   :  { %313 = vxpose.xlu0.b32.start.end [1/1] (short) (narrow) %v311_v62, 32 }
  0xbc   :  { %v485_v2 = vsel %vm308_vm14, %v282_v63, %v484_v1 }
  0xbd   :  { %v486_v3 = vsel %vm310_vm15, %v289_v60, %v485_v2  ;;  %v357_v6 = vpop.permute.xlu1 %356 }
  0xbe   :  { %630 = vmatprep.subr.msk.mxu1 %vm169_vm0, %v486_v3 }
  0xbf   :  { %631 = vmatpush3.xpose.msk.msra.mxu1 %vm169_vm0, %v486_v3 }
  0xc1   :  { %v362_v10 = vpop.permute.xlu1 %361 }
  0xc2   :  { %633 = vmatmul.mubr.msk.f32.vlgmr.msra.gmra.mrb[0].mxu1 %vm169_vm0, %v471_v5 }
  0xc5   :  { %v367_v18 = vpop.permute.xlu1 %366 }
  0xe4   :  { %648 = vset.pattern.permute.xlu0 %v698_v28 }
 0x13b   :  { %v329_v7 = vpop.trf.xlu0 }
 0x13c   :  { %v369_v8 = vmul.f32 %v352_v33, %v329_v7 }
 0x13e   :  { %v374_v13 = vsel %vm373_vm1, %v369_v8, 0.0 }
 0x13f   :  { %v330_v9 = vpop.trf.xlu0 }
 0x140   :  { %v370_v11 = vmul.f32 %v357_v6, %v330_v9  ;;  %v635_v12 = vpack.c.bf16 %v330_v9, %v329_v7 }
 0x142   :  { %v375_v14 = vsel %vm373_vm1, %v370_v11, 0.0  ;;  %636 = vmatprep.subr.bf16.mxu0 %v635_v12 }
 0x143   :  { %v376_v15 = vadd.f32 %v375_v14, %v374_v13  ;;  %638 = vmatpush3.bf16.msra.mxu0 %v635_v12  ;;  %v331_v16 = vpop.trf.xlu0 }
 0x144   :  { %v371_v17 = vmul.f32 %v362_v10, %v331_v16 }
 0x146   :  { %v377_v28 = vsel %vm373_vm1, %v371_v17, 0.0 }
 0x147   :  { %v378_v19 = vadd.f32 %v377_v28, %v376_v15  ;;  %v332_v20 = vpop.trf.xlu0 }
 0x148   :  { %v372_v21 = vmul.f32 %v367_v18, %v332_v20  ;;  %v639_v22 = vpack.c.bf16 %v332_v20, %v331_v16 }
 0x14a   :  { %v379_v23 = vsel %vm373_vm1, %v372_v21, 0.0  ;;  %640 = vmatprep.subr.bf16.mxu0 %v639_v22 }
 0x14b   :  { %v380_v24 = vadd.f32 %v379_v23, %v378_v19  ;;  %642 = vmatpush3.bf16.msra.mxu0 %v639_v22 }
 0x14d   :  { %v381_v30 = vrot.slane %v380_v24, 4 }
 0x14e   :  { %628 = vmatmul.mubr.msk.f32.vlgmr.msra.gmra.mrb[0].mxu0 %vm169_vm0, %v388_v25  ;;  %vm588_vm0 = vcmask 57344  }
 0x14f   :  { %v382_v37 = vadd.f32 %v381_v30, %v380_v24 }
 0x151   :  { %v383_v41 = vrot.slane %v382_v37, 2 }
 0x153   :  { %v384_v44 = vadd.f32 %v383_v41, %v382_v37 }
 0x155   :  { %v385_v49 = vrot.slane %v384_v44, 1 }
 0x157   :  { %v386_v53 = vadd.f32 %v385_v49, %v384_v44 }
 0x195   :  { %v634_v26 = vpop.f32.mrb[0].mxu1 }
 0x196   :  { %v561_v27 = vpop.f32.mrb[1].mxu1 }
 0x221   :  { %v629_v29 = vpop.f32.mrb[0].mxu0 }
 0x222   :  { %v571_v31 = vmul.f32 %v629_v29, %v629_v29  ;;  %v461_v32 = vpop.f32.mrb[1].mxu0 }
 0x223   :  { %v570_v34 = vmul.f32 %v461_v32, %v461_v32 }
 0x224   :  { %v573_v35 = vsub.f32 %v571_v31, %v634_v26 }
 0x225   :  { %v572_v36 = vsub.f32 %v570_v34, %v561_v27 }
 0x226   :  { %v575_v38 = vsel %vm373_vm1, %v573_v35, 0.0 }
 0x227   :  { %v574_v39 = vsel %vm373_vm1, %v572_v36, 0.0 }
 0x228   :  { %v576_v40 = vadd.f32 %v575_v38, %v574_v39 }
 0x22a   :  { %v577_v42 = vrot.slane %v576_v40, 4 }
 0x22c   :  { %v578_v43 = vadd.f32 %v577_v42, %v576_v40 }
 0x22e   :  { %v579_v45 = vrot.slane %v578_v43, 2 }
 0x230   :  { %v580_v48 = vadd.f32 %v579_v45, %v578_v43 }
 0x232   :  { %v581_v50 = vrot.slane %v580_v48, 1 }
 0x234   :  { %v582_v52 = vadd.f32 %v581_v50, %v580_v48 }
 0x236   :  { %v583_v54 = vmul.f32 0.5, %v582_v52 }
 0x238   :  { %v584_v56 = vadd.f32 %v583_v54, %v386_v53 }
 0x23a   :  { %v587_v57 = vadd.f32 %v586_v55, %v584_v56 }
 0x23c   :  { %589 = vst.msk [vmem:[#allocation6] sm:$0x1] %vm588_vm0, %v587_v57 }
 0x23d   :  { %682 = shalt.err (!%p679_p12)
}
 0x23e   :  { %s683_s30 = scalar_lea.hbm %s859_s6, 16 }
 0x23f   :  { %p684_p13 = scmp.ne.s32.totalorder %s859_s6, %s683_s30  ;;  %p687_p0 = scmp.lt.u32.totalorder %s683_s30, %s859_s6 }
 0x241   :  { %p689_p1 = pnand %p687_p0, %p684_p13 }
 0x243   :  { %692 = shalt.err (!%p689_p1)
}
 0x244   :  { %599 = dma.vmem_to_hbm [thread:$0]  %s597_s25, 16, %s859_s6, [#allocation5]  }
 0x245   :  { %695 = dma.done.wait [#allocation5], 16  }
 0x246   :  { %696 = vsyncadd [#allocation5], 4294967280 }
 0x247   :  { %603 = vsyncpa [#allocation4], 1 }
 0x248   :  { %604 = vsyncpa [#allocation5], 1 }

</bundles_post_ra>
